<compile_context>
chip_gen: v6e
topology: v6e:2x2x1
jax: 0.10.0
libtpu: 0.0.40
codegen_flags: <defaults>
</compile_context>

<pallas_src>
import functools

import jax
import jax.numpy as jnp
import numpy as np
from jax.experimental import pallas as pl
from jax.experimental.pallas import tpu as pltpu

KP_VARIANCE = 0.01


def _movement_kernel(grid_ref, kp_ref, o_ref, *, coef):
    # One batch element per grid step.
    #   grid_ref: (2, 1, hw)    normalized coords [gx; gy], precomputed host-side
    #   kp_ref  : (nk, d, 8)    packed [mx, my, sx-mx, sy-my, 0,0,0,0], kp-major
    #   o_ref   : (nk, 3*d, hw) rows ch*d+dd -> ch0: heatmap, ch1: diff_x, ch2: diff_y
    nk, dd3, hw = o_ref.shape
    d = dd3 // 3

    mx = kp_ref[:, :, 0:1]            # (nk, d, 1) driving mean x
    my = kp_ref[:, :, 1:2]            # (nk, d, 1) driving mean y
    dx = kp_ref[:, :, 2:3]            # (nk, d, 1) source_x - driving_x
    dy = kp_ref[:, :, 3:4]            # (nk, d, 1) source_y - driving_y

    gx = grid_ref[0]                  # (1, hw) x coords in [-1, 1]
    gy = grid_ref[1]                  # (1, hw) y coords in [-1, 1]

    # kp2gaussian (scalar kp_variance branch), all (kp, d) pairs at once.
    dxm = gx - mx                     # (nk, d, hw)
    dym = gy - my
    hm = jnp.exp(coef * (dxm * dxm + dym * dym))

    # normalize_heatmap, norm_const == 'sum': per-(kp,d) lane reduce + EUP recip.
    s = jnp.sum(hm, axis=-1, keepdims=True)       # (nk, d, 1)
    hm = hm * pl.reciprocal(s, approx=False)

    o_ref[:, 0:d, :] = hm                                    # heatmap channel
    o_ref[:, d:2 * d, :] = jnp.broadcast_to(dx, (nk, d, hw))  # kp_video_diff x
    o_ref[:, 2 * d:3 * d, :] = jnp.broadcast_to(dy, (nk, d, hw))  # kp_video_diff y


def _movement_embedding_impl(source_image, kp_driving_mean, kp_source_mean,
                             kp_variance):
    bs, _, _, h, w = source_image.shape
    _, d, nk, _ = kp_driving_mean.shape
    hw = h * w

    drv = kp_driving_mean.astype(jnp.float32)
    src = kp_source_mean.astype(jnp.float32)

    # Packed per-(kp, d) params, kp-major (matches output row order):
    # [mx, my, sx-mx, sy-my] padded to 8 lanes.  Tiny (bs*nk*d*8 floats).
    packed = jnp.concatenate([drv, src - drv], axis=-1)          # (bs, d, nk, 4)
    packed = jnp.transpose(packed, (0, 2, 1, 3))                 # (bs, nk, d, 4)
    packed = jnp.pad(packed, ((0, 0), (0, 0), (0, 0), (0, 4)))   # (bs, nk, d, 8)

    # make_coordinate_grid: normalized [-1, 1] coords, flattened row-major
    # (pixel p -> y = p // w, x = p % w).  Precomputed once, loop-invariant.
    gxv = 2.0 * (jnp.arange(w, dtype=jnp.float32) / (w - 1)) - 1.0
    gyv = 2.0 * (jnp.arange(h, dtype=jnp.float32) / (h - 1)) - 1.0
    grid_xy = jnp.stack(
        [jnp.tile(gxv[None, :], (h, 1)).reshape(hw),
         jnp.tile(gyv[:, None], (1, w)).reshape(hw)],
        axis=0).reshape(2, 1, hw)                                # (2, 1, hw)

    coef = -0.5 / float(kp_variance)   # fold Gaussian scale at compile time

    out = pl.pallas_call(
        functools.partial(_movement_kernel, coef=coef),
        out_shape=jax.ShapeDtypeStruct((bs, nk, 3 * d, hw), jnp.float32),
        grid_spec=pl.GridSpec(
            grid=(bs,),
            in_specs=[
                pl.BlockSpec((2, 1, hw), lambda b: (0, 0, 0)),        # coord grid
                pl.BlockSpec((None, nk, d, 8), lambda b: (b, 0, 0, 0)),  # packed kp
            ],
            out_specs=pl.BlockSpec((None, nk, 3 * d, hw),
                                   lambda b: (b, 0, 0, 0)),
        ),
        compiler_params=pltpu.CompilerParams(
            dimension_semantics=("parallel",)),
    )(grid_xy, packed)

    # (bs, nk, 3*d, h*w) -> (bs, nk*3, d, h, w): pure contiguous view, no copy.
    return out.reshape(bs, nk * 3, d, h, w)


_movement_embedding_jit = jax.jit(_movement_embedding_impl, static_argnums=(3,))


def movement_embedding(source_image, kp_driving_mean, kp_source_mean,
                       kp_variance=KP_VARIANCE):
    """source_image: (bs, C, T, h, w); kp_*_mean: (bs, d, num_kp, 2).
    Returns (bs, num_kp*3, d, h, w) float32 (matches PyTorch forward output)."""
    return _movement_embedding_jit(source_image, kp_driving_mean,
                                   kp_source_mean, float(kp_variance))


def _reference(source_image, kp_drv, kp_src, kp_variance=KP_VARIANCE):
    """Pure-JAX reference mirroring the PyTorch forward."""
    bs, _, _, h, w = source_image.shape
    _, d, nk, _ = kp_drv.shape
    x = 2.0 * (jnp.arange(w, dtype=jnp.float32) / (w - 1)) - 1.0
    y = 2.0 * (jnp.arange(h, dtype=jnp.float32) / (h - 1)) - 1.0
    grid = jnp.stack([jnp.tile(x[None, :], (h, 1)),
                      jnp.tile(y[:, None], (1, w))], axis=-1)        # (h, w, 2)
    mean = kp_drv[:, :, :, None, None, :]                            # (bs,d,nk,1,1,2)
    ms = grid[None, None, None] - mean
    hm = jnp.exp(-0.5 * jnp.sum(ms * ms, -1) / kp_variance)          # (bs,d,nk,h,w)
    hm = hm / jnp.sum(hm.reshape(bs, d, nk, -1), -1)[..., None, None]
    hm = hm[:, :, :, None]                                           # (bs,d,nk,1,h,w)
    diff = kp_src - kp_drv                                           # (bs,d,nk,2)
    diff_map = jnp.broadcast_to(diff[:, :, :, :, None, None], (bs, d, nk, 2, h, w))
    enc = jnp.concatenate([hm, diff_map], axis=3)                    # (bs,d,nk,3,h,w)
    enc = enc.reshape(bs, d, nk * 3, h, w)
    return jnp.transpose(enc, (0, 2, 1, 3, 4))                       # (bs,nk*3,d,h,w)


if __name__ == "__main__":
    key = jax.random.PRNGKey(0)
    k0, k1, k2 = jax.random.split(key, 3)

    bs, C, T, h, w = 2, 3, 1, 16, 16
    d, num_kp = 4, 6

    source_image = jax.random.normal(k0, (bs, C, T, h, w), dtype=jnp.float32)
    kp_driving_mean = jax.random.uniform(k1, (bs, d, num_kp, 2),
                                         minval=-1.0, maxval=1.0, dtype=jnp.float32)
    kp_source_mean = jax.random.uniform(k2, (bs, d, num_kp, 2),
                                        minval=-1.0, maxval=1.0, dtype=jnp.float32)

    out = movement_embedding(source_image, kp_driving_mean, kp_source_mean)
    out = jax.block_until_ready(out)

    ref = jax.block_until_ready(
        _reference(source_image, kp_driving_mean, kp_source_mean))

    assert out.shape == (bs, num_kp * 3, d, h, w), out.shape
    np.testing.assert_allclose(np.asarray(out), np.asarray(ref),
                               rtol=1e-5, atol=1e-6)
    print("KERNEL_OK")
</pallas_src>

<mosaic_0001>
module attributes {stable_mosaic.version = 11 : i64} {
  func.func @_movement_kernel(%arg0: i32, %arg1: memref<2x1x256xf32, #tpu.memory_space<vmem>>, %arg2: memref<1x6x4x8xf32, #tpu.memory_space<vmem>>, %arg3: memref<1x6x12x256xf32, #tpu.memory_space<vmem>>) attributes {dimension_semantics = [#tpu.dimension_semantics<parallel>], iteration_bounds = array<i64: 2>, scalar_prefetch = 0 : i64, scratch_operands = 0 : i64, tpu.core_type = #tpu.core_type<tc>, window_params = [{pipeline_mode = #tpu.pipeline_mode<synchronous>, transform_indices = @transform_0, window_bounds = array<i64: 2, 1, 256>}, {transform_indices = @transform_1, window_bounds = array<i64: 1, 6, 4, 8>}, {transform_indices = @transform_2, window_bounds = array<i64: 1, 6, 12, 256>}]} {
    %c0 = arith.constant 0 : index
    %c0_0 = arith.constant 0 : index
    %c0_1 = arith.constant 0 : index
    %c0_2 = arith.constant 0 : index
    %0 = vector.load %arg2[%c0, %c0_0, %c0_1, %c0_2] : memref<1x6x4x8xf32, #tpu.memory_space<vmem>>, vector<1x6x4x1xf32>
    %1 = vector.shape_cast %0 : vector<1x6x4x1xf32> to vector<6x4x1xf32>
    %c0_3 = arith.constant 0 : index
    %c0_4 = arith.constant 0 : index
    %c0_5 = arith.constant 0 : index
    %c1 = arith.constant 1 : index
    %2 = vector.load %arg2[%c0_3, %c0_4, %c0_5, %c1] : memref<1x6x4x8xf32, #tpu.memory_space<vmem>>, vector<1x6x4x1xf32>
    %3 = vector.shape_cast %2 : vector<1x6x4x1xf32> to vector<6x4x1xf32>
    %c0_6 = arith.constant 0 : index
    %c0_7 = arith.constant 0 : index
    %c0_8 = arith.constant 0 : index
    %c2 = arith.constant 2 : index
    %4 = vector.load %arg2[%c0_6, %c0_7, %c0_8, %c2] : memref<1x6x4x8xf32, #tpu.memory_space<vmem>>, vector<1x6x4x1xf32>
    %5 = vector.shape_cast %4 : vector<1x6x4x1xf32> to vector<6x4x1xf32>
    %c0_9 = arith.constant 0 : index
    %c0_10 = arith.constant 0 : index
    %c0_11 = arith.constant 0 : index
    %c3 = arith.constant 3 : index
    %6 = vector.load %arg2[%c0_9, %c0_10, %c0_11, %c3] : memref<1x6x4x8xf32, #tpu.memory_space<vmem>>, vector<1x6x4x1xf32>
    %7 = vector.shape_cast %6 : vector<1x6x4x1xf32> to vector<6x4x1xf32>
    %c0_12 = arith.constant 0 : index
    %c0_13 = arith.constant 0 : index
    %c0_14 = arith.constant 0 : index
    %8 = vector.load %arg1[%c0_12, %c0_13, %c0_14] : memref<2x1x256xf32, #tpu.memory_space<vmem>>, vector<1x1x256xf32>
    %9 = vector.shape_cast %8 : vector<1x1x256xf32> to vector<1x256xf32>
    %c1_15 = arith.constant 1 : index
    %c0_16 = arith.constant 0 : index
    %c0_17 = arith.constant 0 : index
    %10 = vector.load %arg1[%c1_15, %c0_16, %c0_17] : memref<2x1x256xf32, #tpu.memory_space<vmem>>, vector<1x1x256xf32>
    %11 = vector.shape_cast %10 : vector<1x1x256xf32> to vector<1x256xf32>
    %12 = vector.shape_cast %9 : vector<1x256xf32> to vector<1x1x256xf32>
    %13 = vector.broadcast %12 : vector<1x1x256xf32> to vector<6x4x256xf32>
    %14 = vector.broadcast %1 : vector<6x4x1xf32> to vector<6x4x256xf32>
    %15 = arith.subf %13, %14 : vector<6x4x256xf32>
    %16 = vector.shape_cast %11 : vector<1x256xf32> to vector<1x1x256xf32>
    %17 = vector.broadcast %16 : vector<1x1x256xf32> to vector<6x4x256xf32>
    %18 = vector.broadcast %3 : vector<6x4x1xf32> to vector<6x4x256xf32>
    %19 = arith.subf %17, %18 : vector<6x4x256xf32>
    %20 = arith.mulf %15, %15 : vector<6x4x256xf32>
    %21 = arith.mulf %19, %19 : vector<6x4x256xf32>
    %22 = arith.addf %20, %21 : vector<6x4x256xf32>
    %cst = arith.constant -5.000000e+01 : f32
    %23 = vector.broadcast %cst : f32 to vector<6x4x256xf32>
    %24 = arith.mulf %23, %22 : vector<6x4x256xf32>
    %25 = math.exp %24 : vector<6x4x256xf32>
    %cst_18 = arith.constant dense<0.000000e+00> : vector<6x4xf32>
    %26 = vector.multi_reduction <add>, %25, %cst_18 [2] : vector<6x4x256xf32> to vector<6x4xf32>
    %27 = vector.shape_cast %26 : vector<6x4xf32> to vector<6x4x1xf32>
    %28 = tpu.reciprocal %27 : vector<6x4x1xf32> -> vector<6x4x1xf32>
    %29 = vector.broadcast %28 : vector<6x4x1xf32> to vector<6x4x256xf32>
    %30 = arith.mulf %25, %29 : vector<6x4x256xf32>
    %c0_19 = arith.constant 0 : index
    %c0_20 = arith.constant 0 : index
    %c0_21 = arith.constant 0 : index
    %c0_22 = arith.constant 0 : index
    %31 = vector.load %arg3[%c0_19, %c0_20, %c0_21, %c0_22] : memref<1x6x12x256xf32, #tpu.memory_space<vmem>>, vector<1x6x4x256xf32>
    %32 = vector.shape_cast %31 : vector<1x6x4x256xf32> to vector<6x4x256xf32>
    %33 = vector.shape_cast %30 : vector<6x4x256xf32> to vector<1x6x4x256xf32>
    tpu.vector_store %arg3[%c0_19, %c0_20, %c0_21, %c0_22], %33 {strides = array<i32>} : memref<1x6x12x256xf32, #tpu.memory_space<vmem>>, vector<1x6x4x256xf32>,
    %34 = vector.shape_cast %5 : vector<6x4x1xf32> to vector<6x4x1xf32>
    %35 = vector.broadcast %34 : vector<6x4x1xf32> to vector<6x4x256xf32>
    %c0_23 = arith.constant 0 : index
    %c0_24 = arith.constant 0 : index
    %c4 = arith.constant 4 : index
    %c0_25 = arith.constant 0 : index
    %36 = vector.load %arg3[%c0_23, %c0_24, %c4, %c0_25] : memref<1x6x12x256xf32, #tpu.memory_space<vmem>>, vector<1x6x4x256xf32>
    %37 = vector.shape_cast %36 : vector<1x6x4x256xf32> to vector<6x4x256xf32>
    %38 = vector.shape_cast %35 : vector<6x4x256xf32> to vector<1x6x4x256xf32>
    tpu.vector_store %arg3[%c0_23, %c0_24, %c4, %c0_25], %38 {strides = array<i32>} : memref<1x6x12x256xf32, #tpu.memory_space<vmem>>, vector<1x6x4x256xf32>,
    %39 = vector.shape_cast %7 : vector<6x4x1xf32> to vector<6x4x1xf32>
    %40 = vector.broadcast %39 : vector<6x4x1xf32> to vector<6x4x256xf32>
    %c0_26 = arith.constant 0 : index
    %c0_27 = arith.constant 0 : index
    %c8 = arith.constant 8 : index
    %c0_28 = arith.constant 0 : index
    %41 = vector.load %arg3[%c0_26, %c0_27, %c8, %c0_28] : memref<1x6x12x256xf32, #tpu.memory_space<vmem>>, vector<1x6x4x256xf32>
    %42 = vector.shape_cast %41 : vector<1x6x4x256xf32> to vector<6x4x256xf32>
    %43 = vector.shape_cast %40 : vector<6x4x256xf32> to vector<1x6x4x256xf32>
    tpu.vector_store %arg3[%c0_26, %c0_27, %c8, %c0_28], %43 {strides = array<i32>} : memref<1x6x12x256xf32, #tpu.memory_space<vmem>>, vector<1x6x4x256xf32>,
    return
  }
  func.func @transform_0(%arg0: i32) -> (i32, i32, i32) {
    %c0_i32 = arith.constant 0 : i32
    %c0_i32_0 = arith.constant 0 : i32
    %c0_i32_1 = arith.constant 0 : i32
    %c0_i32_2 = arith.constant 0 : i32
    return %c0_i32, %c0_i32_0, %c0_i32_1 : i32, i32, i32
  }
  func.func @transform_1(%arg0: i32) -> (i32, i32, i32, i32) {
    %c0_i32 = arith.constant 0 : i32
    %c0_i32_0 = arith.constant 0 : i32
    %c0_i32_1 = arith.constant 0 : i32
    %c0_i32_2 = arith.constant 0 : i32
    return %arg0, %c0_i32, %c0_i32_0, %c0_i32_1 : i32, i32, i32, i32
  }
  func.func @transform_2(%arg0: i32) -> (i32, i32, i32, i32) {
    %c0_i32 = arith.constant 0 : i32
    %c0_i32_0 = arith.constant 0 : i32
    %c0_i32_1 = arith.constant 0 : i32
    %c0_i32_2 = arith.constant 0 : i32
    return %arg0, %c0_i32, %c0_i32_0, %c0_i32_1 : i32, i32, i32, i32
  }
}

</mosaic_0001>

<bundles_post_ra>
// kernel: tile.10
= control target key start
LH: loop header
LB: loop body
LE: loop exit
PB: predicated region body
PF: predicated region fallthrough
CT: control target
= control target key end

     0   :  { %s28_s0 = inlined_call_operand.vmem [shape: f32[16], index: 0, kind: input, shape index: {}]   ;;  %s29_s1 = inlined_call_operand.vmem [shape: f32[16,1,1,16], index: 1, kind: output, shape index: {}]  }
   0x1   :  { %v4_v0 = vld [vmem:[%s28_s0] ss:$0 sm:$0xff] }
   0x2   :  { %5 = vst [vmem:[%s29_s1] sm:$0xff] %v4_v0  ;;  %8 = vst [vmem:[%s29_s1 + $0x8] sm:$0xff] %v4_v0 }

// kernel: tile.14
= control target key start
LH: loop header
LB: loop body
LE: loop exit
PB: predicated region body
PF: predicated region fallthrough
CT: control target
= control target key end

     0   :  { %s7_s6 = smov 3  ;;  %s21_s9 = smov 3  ;;  %vm4_vm0 = vcmask 130048   ;;  %vm11_vm1 = vcmask 1048448   ;;  %vm18_vm2 = vcmask 917248   ;;  %vm25_vm3 = vcmask 786048   ;;  %s131_s0 = inlined_call_operand.vmem [shape: f32[16,1,1,16], index: 0, kind: input, shape index: {}]   ;;  %s132_s1 = inlined_call_operand.vmem [shape: f32[1,256], index: 1, kind: output, shape index: {}]  }
   0x1   :  { %v69_v0 = vld [vmem:[%s131_s0 + $0x7] ss:$8 sm:%s7_s6]   ;;  %s84_s10 = smov 112   ;;  %v71_v1 = vld [vmem:[%s131_s0 + $0x5] ss:$8 sm:%s21_s9]   ;;  %s14_s13 = smov 3 }
   0x2   :  { %9 = vrot.lane.b32.xlu0 %v69_v0, %s84_s10  ;;  %s85_s14 = smov 80   ;;  %v70_v2 = vld [vmem:[%s131_s0 + $0x6] ss:$8 sm:%s14_s13]   ;;  %s28_s17 = smov 3  ;;  %vm32_vm4 = vcmask 654848   ;;  %vm39_vm5 = vcmask 523648  }
   0x3   :  { %23 = vrot.lane.b32.xlu1 %v71_v1, %s85_s14  ;;  %v72_v3 = vld [vmem:[%s131_s0 + $0x4] ss:$8 sm:%s28_s17]   ;;  %s35_s20 = smov 3  ;;  %s42_s21 = smov 3  ;;  %vm46_vm6 = vcmask 392448   ;;  %vm53_vm7 = vcmask 261248  }
   0x4   :  { %s86_s22 = smov 96   ;;  %s87_s23 = smov 64   ;;  %v73_v4 = vld [vmem:[%s131_s0 + $0x3] ss:$8 sm:%s35_s20]   ;;  %v74_v5 = vld [vmem:[%s131_s0 + $0x2] ss:$8 sm:%s42_s21]  }
   0x5   :  { %s2_s26 = smov 3  ;;  %s49_s29 = smov 3 }
   0x6   :  { %16 = vrot.lane.b32.xlu0 %v70_v2, %s86_s22  ;;  %v3_v6 = vld [vmem:[%s131_s0] ss:$8 sm:%s2_s26]   ;;  %s88_s3 = smov 48   ;;  %s89_s4 = smov 32  }
   0x7   :  { %30 = vrot.lane.b32.xlu1 %v72_v3, %s87_s23  ;;  %5 = vst.msk [vmem:[#allocation0] ss:$8 sm:$0x3] %vm4_vm0, %v3_v6   ;;  %v75_v7 = vld [vmem:[%s131_s0 + $0x1] ss:$8 sm:%s49_s29]   ;;  %s90_s0 = smov 16  }
   0xa   :  { %37 = vrot.lane.b32.xlu0 %v73_v4, %s88_s3 }
   0xb   :  { %44 = vrot.lane.b32.xlu1 %v74_v5, %s89_s4 }
   0xe   :  { %51 = vrot.lane.b32.xlu0 %v75_v7, %s90_s0 }
  0x74   :  { %v10_v8 = vpop.permute.xlu0 %9  }
  0x75   :  { %12 = vst.msk [vmem:[#allocation0] ss:$8 sm:$0x3] %vm11_vm1, %v10_v8   ;;  %v24_v9 = vpop.permute.xlu1 %23  }
  0x78   :  { %v17_v10 = vpop.permute.xlu0 %16  }
  0x79   :  { %19 = vst.msk [vmem:[#allocation0] ss:$8 sm:$0x3] %vm18_vm2, %v17_v10   ;;  %v31_v11 = vpop.permute.xlu1 %30  }
  0x7a   :  { %26 = vst.msk [vmem:[#allocation0] ss:$8 sm:$0x3] %vm25_vm3, %v24_v9  }
  0x7b   :  { %33 = vst.msk [vmem:[#allocation0] ss:$8 sm:$0x3] %vm32_vm4, %v31_v11  }
  0x7c   :  { %v38_v12 = vpop.permute.xlu0 %37  }
  0x7d   :  { %40 = vst.msk [vmem:[#allocation0] ss:$8 sm:$0x3] %vm39_vm5, %v38_v12   ;;  %v45_v13 = vpop.permute.xlu1 %44  }
  0x7e   :  { %47 = vst.msk [vmem:[#allocation0] ss:$8 sm:$0x3] %vm46_vm6, %v45_v13  }
  0x80   :  { %v52_v14 = vpop.permute.xlu0 %51  }
  0x81   :  { %54 = vst.msk [vmem:[#allocation0] ss:$8 sm:$0x3] %vm53_vm7, %v52_v14  }
  0x88   :  { %v59_v15 = vld [vmem:[#allocation0] sm:$0x1]  ;;  %v64_v16 = vld [vmem:[#allocation0 + $0x8] sm:$0x1] }
  0x89   :  { %62 = vst [vmem:[%s132_s1] sm:$0x1] %v59_v15  ;;  %76 = vst [vmem:[%s132_s1 + $0x1] sm:$0x1] %v64_v16 }

// kernel: _movement_embedding_impl.1
= control target key start
LH: loop header
LB: loop body
LE: loop exit
PB: predicated region body
PF: predicated region fallthrough
CT: control target
= control target key end

     0   :  { %s614_s9 = smov 0   ;;  %s789_s0 = inlined_call_operand.vmem [shape: f32[2,1,256], index: 0, kind: input, shape index: {}]   ;;  %s790_s1 = inlined_call_operand.vmem [shape: f32[2,6,4,8], index: 1, kind: input, shape index: {}]   ;;  %s791_s2 = inlined_call_operand.vmem [shape: f32[2,6,12,256], index: 2, kind: output, shape index: {}]  }
   0x1 LB: > { %s519_s10 = sadd.s32 4294967295, %s593_s9   ;;  %p523_p0 = scmp.ge.s32.totalorder %s593_s9, 1  ;;  %s593_s9 = sphi %s614_s9, %s12_s9  }
   0x2   : > { %p112_p1 = scmp.lt.s32.totalorder %s593_s9, 3 }
   0x4   : > { %p113_p2 = pnand %p523_p0, %p112_p1 }
   0x5   : > { %p134_p3 = scmp.lt.s32.totalorder (!%p113_p2), %s519_s10, 1 }
   0x6   : > { %116 = sbr.rel (%p113_p2) target bundleno = 396 (0x18c), region = 28 }
   0xb   : > { %v595_v0 = vmov 0   ;;  %s793_s10 = smov (!%p134_p3, %s519_s10), 1  ;;  %v596_v7 = vmov 1   ;;  %v597_v8 = vmov 2   ;;  %v598_v9 = vmov 3  }
   0xc   : > { %544 = vset.pattern.permute.xlu1 %v595_v0  ;;  %543 = vset.pattern.permute.xlu0 %v595_v0  ;;  %s529_s11 = smul.u32 24, %s793_s10  ;;  %v154_v10 = vlaneseq  ;;  %v150_v16 = vld [vmem:[%s789_s0] sm:$0x3]  ;;  %v526_v21 = vld [vmem:[%s789_s0 + $0x2] sm:$0x3]  ;;  %vm325_vm0 = vcmask 1043456  }
   0xd   : > { %s530_s19 = smul.u32 192, %s793_s10 }
   0xe   : > { %s138_s14 = scalar_lea.vmem %s790_s1, %s529_s11  ;;  %v155_v11 = vshrl.u32 %v154_v10, 7 }
   0xf   : > { %v146_v1 = vld [vmem:[%s138_s14 + $0x8] sm:$0xf]  ;;  %v144_v2 = vld [vmem:[%s138_s14] sm:$0xf]  ;;  %v628_v3 = vld [vmem:[%s138_s14 + $0xc] sm:$0xf]  ;;  %s685_s22 = scalar_lea.vmem %s791_s2, %s530_s19 }
  0x10   : > { %176 = vperm.xlu1 %544, %v146_v1   ;;  %166 = vperm.xlu0 %543, %v144_v2   ;;  %v145_v4 = vld [vmem:[%s138_s14 + $0x4] sm:$0xf]  ;;  %v631_v5 = vld [vmem:[%s138_s14 + $0x14] sm:$0xf]  ;;  %v633_v6 = vld [vmem:[%s138_s14 + $0x10] sm:$0xf] }
  0x11   : > { %v156_v12 = vsub.s32 0, %v155_v11  ;;  %v160_v13 = vsub.s32 1, %v155_v11 }
  0x13   : > { %v646_v17 = vrot.slane %v150_v16, %v156_v12  ;;  %v648_v18 = vrot.slane %v150_v16, %v160_v13  ;;  %v657_v26 = vrot.slane %v526_v21, %v156_v12  ;;  %v659_v27 = vrot.slane %v526_v21, %v160_v13 }
  0x14   : > { %181 = vperm.xlu1 %544, %v628_v3   ;;  %171 = vperm.xlu0 %543, %v145_v4  }
  0x18   : > { %191 = vperm.xlu1 %544, %v631_v5   ;;  %186 = vperm.xlu0 %543, %v633_v6  }
  0x1c   : > { %546 = vset.pattern.permute.xlu1 %v596_v7  ;;  %545 = vset.pattern.permute.xlu0 %v596_v7 }
  0x1d   : > { %222 = vperm.xlu1 %546, %v145_v4   ;;  %218 = vperm.xlu0 %545, %v144_v2  }
  0x21   : > { %226 = vperm.xlu1 %546, %v146_v1   ;;  %230 = vperm.xlu0 %545, %v628_v3  }
  0x25   : > { %234 = vperm.xlu1 %546, %v633_v6   ;;  %238 = vperm.xlu0 %545, %v631_v5  }
  0x29   : > { %548 = vset.pattern.permute.xlu1 %v597_v8  ;;  %547 = vset.pattern.permute.xlu0 %v597_v8 }
  0x2a   : > { %390 = vperm.xlu1 %548, %v145_v4   ;;  %387 = vperm.xlu0 %547, %v144_v2  }
  0x2e   : > { %393 = vperm.xlu1 %548, %v146_v1   ;;  %550 = vset.pattern.permute.xlu0 %v598_v9 }
  0x32   : > { %396 = vperm.xlu1 %548, %v628_v3  }
  0x36   : > { %399 = vperm.xlu1 %548, %v633_v6  }
  0x3a   : > { %402 = vperm.xlu1 %548, %v631_v5  }
  0x3e   : > { %549 = vset.pattern.permute.xlu1 %v598_v9 }
  0x3f   : > { %429 = vperm.xlu1 %549, %v144_v2  }
  0x43   : > { %433 = vperm.xlu1 %549, %v145_v4  }
  0x47   : > { %437 = vperm.xlu1 %549, %v146_v1  }
  0x8b   : > { %v167_v14 = vpop.permute.xlu0 %166  ;;  %v177_v15 = vpop.permute.xlu1 %176 }
  0x8c   : > { %v194_v22 = vsub.f32 %v646_v17, %v167_v14  ;;  %v195_v23 = vsub.f32 %v648_v18, %v167_v14  ;;  %v198_v28 = vsub.f32 %v646_v17, %v177_v15  ;;  %v199_v29 = vsub.f32 %v648_v18, %v177_v15 }
  0x8e   : > { %v253_v32 = vmul.f32 %v194_v22, %v194_v22  ;;  %v254_v33 = vmul.f32 %v195_v23, %v195_v23  ;;  %v257_v44 = vmul.f32 %v198_v28, %v198_v28  ;;  %v258_v45 = vmul.f32 %v199_v29, %v199_v29 }
  0x8f   : > { %v172_v19 = vpop.permute.xlu0 %171  ;;  %v182_v20 = vpop.permute.xlu1 %181 }
  0x90   : > { %v196_v30 = vsub.f32 %v646_v17, %v172_v19  ;;  %v197_v31 = vsub.f32 %v648_v18, %v172_v19  ;;  %v200_v34 = vsub.f32 %v646_v17, %v182_v20  ;;  %v201_v35 = vsub.f32 %v648_v18, %v182_v20 }
  0x92   : > { %v255_v46 = vmul.f32 %v196_v30, %v196_v30  ;;  %v256_v47 = vmul.f32 %v197_v31, %v197_v31  ;;  %v259_v52 = vmul.f32 %v200_v34, %v200_v34  ;;  %v260_v53 = vmul.f32 %v201_v35, %v201_v35 }
  0x93   : > { %v187_v24 = vpop.permute.xlu0 %186  ;;  %v655_v25 = vpop.permute.xlu1 %191 }
  0x94   : > { %v202_v36 = vsub.f32 %v646_v17, %v187_v24  ;;  %v203_v37 = vsub.f32 %v648_v18, %v187_v24 }
  0x96   : > { %v261_v54 = vmul.f32 %v202_v36, %v202_v36  ;;  %v262_v55 = vmul.f32 %v203_v37, %v203_v37 }
  0x98   : > { %v223_v38 = vpop.permute.xlu1 %222  ;;  %v219_v39 = vpop.permute.xlu0 %218 }
  0x99   : > { %v243_v40 = vsub.f32 %v657_v26, %v223_v38  ;;  %v244_v41 = vsub.f32 %v659_v27, %v223_v38  ;;  %v241_v42 = vsub.f32 %v657_v26, %v219_v39  ;;  %v242_v43 = vsub.f32 %v659_v27, %v219_v39 }
  0x9b   : > { %v267_v48 = vmul.f32 %v243_v40, %v243_v40  ;;  %v268_v49 = vmul.f32 %v244_v41, %v244_v41  ;;  %v265_v50 = vmul.f32 %v241_v42, %v241_v42  ;;  %v266_v51 = vmul.f32 %v242_v43, %v242_v43 }
  0x9c   : > { %v227_v56 = vpop.permute.xlu1 %226  ;;  %v231_v57 = vpop.permute.xlu0 %230 }
  0x9d   : > { %v279_v58 = vadd.f32 %v267_v48, %v255_v46  ;;  %v280_v59 = vadd.f32 %v268_v49, %v256_v47  ;;  %v277_v60 = vadd.f32 %v265_v50, %v253_v32  ;;  %v278_v61 = vadd.f32 %v266_v51, %v254_v33 }
  0x9e   : > { %v245_v62 = vsub.f32 %v657_v26, %v227_v56  ;;  %v246_v63 = vsub.f32 %v659_v27, %v227_v56  ;;  %v247_v0 = vsub.f32 %v657_v26, %v231_v57  ;;  %v248_v1 = vsub.f32 %v659_v27, %v231_v57 }
  0x9f   : > { %v291_v2 = vmul.f32 -50.0, %v279_v58  ;;  %v292_v4 = vmul.f32 -50.0, %v280_v59  ;;  %v289_v7 = vmul.f32 -50.0, %v277_v60  ;;  %v290_v8 = vmul.f32 -50.0, %v278_v61 }
  0xa0   : > { %v269_v9 = vmul.f32 %v245_v62, %v245_v62  ;;  %v270_v10 = vmul.f32 %v246_v63, %v246_v63  ;;  %v271_v11 = vmul.f32 %v247_v0, %v247_v0  ;;  %v272_v12 = vmul.f32 %v248_v1, %v248_v1  ;;  %v235_v13 = vpop.permute.xlu1 %234  ;;  %v680_v30 = vpop.permute.xlu0 %238 }
  0xa1   : > { %v305_v14 = vmul.f32 1.442695, %v291_v2  ;;  %v307_v15 = vmul.f32 1.442695, %v292_v4  ;;  %v301_v16 = vmul.f32 1.442695, %v289_v7  ;;  %v249_v19 = vsub.f32 %v657_v26, %v235_v13 }
  0xa2   : > { %v303_v20 = vmul.f32 1.442695, %v290_v8  ;;  %v281_v21 = vadd.f32 %v269_v9, %v257_v44  ;;  %v282_v22 = vadd.f32 %v270_v10, %v258_v45  ;;  %v283_v23 = vadd.f32 %v271_v11, %v259_v52 }
  0xa3   : > { %551 = vpow2.f32 %v305_v14  ;;  %v284_v24 = vadd.f32 %v272_v12, %v260_v53  ;;  %v250_v28 = vsub.f32 %v659_v27, %v235_v13  ;;  %v273_v29 = vmul.f32 %v249_v19, %v249_v19 }
  0xa4   : > { %553 = vpow2.f32 %v307_v15  ;;  %v293_v31 = vmul.f32 -50.0, %v281_v21  ;;  %v294_v32 = vmul.f32 -50.0, %v282_v22  ;;  %v295_v33 = vmul.f32 -50.0, %v283_v23 }
  0xa5   : > { %555 = vpow2.f32 %v301_v16  ;;  %v296_v34 = vmul.f32 -50.0, %v284_v24  ;;  %v274_v35 = vmul.f32 %v250_v28, %v250_v28  ;;  %v285_v36 = vadd.f32 %v273_v29, %v261_v54  ;;  %v391_v37 = vpop.permute.xlu1 %390  ;;  %v388_v44 = vpop.permute.xlu0 %387 }
  0xa6   : > { %557 = vpow2.f32 %v303_v20  ;;  %v309_v38 = vmul.f32 1.442695, %v293_v31  ;;  %v311_v39 = vmul.f32 1.442695, %v294_v32  ;;  %v313_v40 = vmul.f32 1.442695, %v295_v33 }
  0xa7   : > { %v315_v41 = vmul.f32 1.442695, %v296_v34  ;;  %v286_v42 = vadd.f32 %v274_v35, %v262_v55  ;;  %v297_v43 = vmul.f32 -50.0, %v285_v36  ;;  %v405_v45 = vrot.slane %v391_v37, 4 }
  0xa8   : > { %559 = vpow2.f32 %v309_v38  ;;  %v404_v46 = vrot.slane %v388_v44, 4  ;;  %v251_v31 = vsub.f32 %v657_v26, %v680_v30  ;;  %v252_v32 = vsub.f32 %v659_v27, %v680_v30 }
  0xa9   : > { %561 = vpow2.f32 %v311_v39  ;;  %v298_v47 = vmul.f32 -50.0, %v286_v42  ;;  %v317_v48 = vmul.f32 1.442695, %v297_v43  ;;  %v394_v49 = vpop.permute.xlu1 %393  ;;  %418 = vst [vmem:[%s685_s22 + $0x20] sm:$0xf0] %v405_v45  ;;  %v204_v33 = vsub.f32 %v646_v17, %v655_v25 }
  0xaa   : > { %563 = vpow2.f32 %v313_v40  ;;  %419 = vst [vmem:[%s685_s22 + $0x28] sm:$0xf0] %v405_v45  ;;  %v406_v50 = vrot.slane %v394_v49, 4  ;;  %416 = vst [vmem:[%s685_s22] sm:$0xf0] %v404_v46  ;;  %v205_v34 = vsub.f32 %v648_v18, %v655_v25  ;;  %v275_v35 = vmul.f32 %v251_v31, %v251_v31 }
  0xab   : > { %417 = vst [vmem:[%s685_s22 + $0x8] sm:$0xf0] %v404_v46  ;;  %565 = vpow2.f32 %v315_v41  ;;  %v319_v51 = vmul.f32 1.442695, %v298_v47  ;;  %v276_v36 = vmul.f32 %v252_v32, %v252_v32  ;;  %v263_v37 = vmul.f32 %v204_v33, %v204_v33 }
  0xac   : > { %567 = vpow2.f32 %v317_v48  ;;  %420 = vst [vmem:[%s685_s22 + $0x40] sm:$0xf0] %v406_v50  ;;  %421 = vst [vmem:[%s685_s22 + $0x48] sm:$0xf0] %v406_v50  ;;  %v264_v38 = vmul.f32 %v205_v34, %v205_v34 }
  0xad   : > { %569 = vpow2.f32 %v319_v51  ;;  %v397_v52 = vpop.permute.xlu1 %396  ;;  %v287_v39 = vadd.f32 %v275_v35, %v263_v37 }
  0xae   : > { %v407_v53 = vrot.slane %v397_v52, 4  ;;  %v288_v40 = vadd.f32 %v276_v36, %v264_v38 }
  0xaf   : > { %v299_v41 = vmul.f32 -50.0, %v287_v39 }
  0xb0   : > { %v693_v54 = vpop.eup %551  ;;  %422 = vst [vmem:[%s685_s22 + $0x60] sm:$0xf0] %v407_v53  ;;  %423 = vst [vmem:[%s685_s22 + $0x68] sm:$0xf0] %v407_v53  ;;  %v300_v42 = vmul.f32 -50.0, %v288_v40 }
  0xb1   : > { %v697_v55 = vpop.eup %553  ;;  %v331_v56 = vsel %vm325_vm0, %v693_v54, 0.0  ;;  %v400_v57 = vpop.permute.xlu1 %399  ;;  %v321_v26 = vmul.f32 1.442695, %v299_v41 }
  0xb2   : > { %v701_v58 = vpop.eup %555  ;;  %v332_v59 = vsel %vm325_vm0, %v697_v55, 0.0  ;;  %v408_v60 = vrot.slane %v400_v57, 4  ;;  %v323_v27 = vmul.f32 1.442695, %v300_v42 }
  0xb3   : > { %v705_v61 = vpop.eup %557  ;;  %v333_v62 = vadd.f32 %v332_v59, %v331_v56  ;;  %v326_v63 = vsel %vm325_vm0, %v701_v58, 0.0  ;;  %571 = vpow2.f32 %v321_v26 }
  0xb4   : > { %v327_v0 = vsel %vm325_vm0, %v705_v61, 0.0  ;;  %424 = vst [vmem:[%s685_s22 + $0x80] sm:$0xf0] %v408_v60  ;;  %425 = vst [vmem:[%s685_s22 + $0x88] sm:$0xf0] %v408_v60  ;;  %573 = vpow2.f32 %v323_v27 }
  0xb5   : > { %v713_v1 = vpop.eup %559  ;;  %334 = vadd.xlane.f32.xlu0 %v333_v62  ;;  %v328_v2 = vadd.f32 %v327_v0, %v326_v63  ;;  %v403_v4 = vpop.permute.xlu1 %402 }
  0xb6   : > { %v715_v7 = vpop.eup %561  ;;  %v336_v8 = vsel %vm325_vm0, %v713_v1, 0.0  ;;  %v409_v9 = vrot.slane %v403_v4, 4 }
  0xb7   : > { %v719_v10 = vpop.eup %563  ;;  %329 = vadd.xlane.f32.xlu1 %v328_v2  ;;  %v337_v11 = vsel %vm325_vm0, %v715_v7, 0.0 }
  0xb8   : > { %v723_v12 = vpop.eup %565  ;;  %v338_v13 = vadd.f32 %v337_v11, %v336_v8  ;;  %v341_v14 = vsel %vm325_vm0, %v719_v10, 0.0  ;;  %426 = vst [vmem:[%s685_s22 + $0xa0] sm:$0xf0] %v409_v9  ;;  %427 = vst [vmem:[%s685_s22 + $0xa8] sm:$0xf0] %v409_v9 }
  0xb9   : > { %v729_v15 = vpop.eup %567  ;;  %v342_v16 = vsel %vm325_vm0, %v723_v12, 0.0 }
  0xba   : > { %v733_v19 = vpop.eup %569  ;;  %339 = vadd.xlane.f32.xlu0 %v338_v13  ;;  %v343_v20 = vadd.f32 %v342_v16, %v341_v14  ;;  %v346_v21 = vsel %vm325_vm0, %v729_v15, 0.0  ;;  %v430_v22 = vpop.permute.xlu1 %429 }
  0xbb   : > { %v347_v23 = vsel %vm325_vm0, %v733_v19, 0.0  ;;  %452 = vst [vmem:[%s685_s22 + $0x10] sm:$0xf] %v430_v22  ;;  %453 = vst [vmem:[%s685_s22 + $0x18] sm:$0xf] %v430_v22 }
  0xbc   : > { %344 = vadd.xlane.f32.xlu1 %v343_v20  ;;  %v348_v24 = vadd.f32 %v347_v23, %v346_v21 }
  0xbe   : > { %349 = vadd.xlane.f32.xlu0 %v348_v24  ;;  %v434_v28 = vpop.permute.xlu1 %433 }
  0xbf   : > { %454 = vst [vmem:[%s685_s22 + $0x30] sm:$0xf] %v434_v28  ;;  %455 = vst [vmem:[%s685_s22 + $0x38] sm:$0xf] %v434_v28 }
  0xc0   : > { %v572_v17 = vpop.eup %571 }
  0xc1   : > { %v574_v30 = vpop.eup %573  ;;  %v351_v18 = vsel %vm325_vm0, %v572_v17, 0.0 }
  0xc2   : > { %v438_v29 = vpop.permute.xlu1 %437  ;;  %v352_v25 = vsel %vm325_vm0, %v574_v30, 0.0 }
  0xc3   : > { %456 = vst [vmem:[%s685_s22 + $0x50] sm:$0xf] %v438_v29  ;;  %457 = vst [vmem:[%s685_s22 + $0x58] sm:$0xf] %v438_v29 }
  0xcd   : > { %445 = vperm.xlu1 %549, %v633_v6   ;;  %v353_v6 = vadd.f32 %v352_v25, %v351_v18 }
  0xd4   : > { %441 = vperm.xlu0 %550, %v628_v3  }
  0xf1   : > { %354 = vadd.xlane.f32.xlu1 %v353_v6 }
 0x102   : > { %449 = vperm.xlu1 %549, %v631_v5  }
 0x13e   : > { %v335_v43 = vpop.xlane.xlu0 %334 }
 0x13f   : > { %575 = vrcp.f32 %v335_v43 }
 0x140   : > { %v330_v44 = vpop.xlane.xlu1 %329 }
 0x141   : > { %577 = vrcp.f32 %v330_v44 }
 0x143   : > { %v340_v3 = vpop.xlane.xlu0 %339 }
 0x144   : > { %579 = vrcp.f32 %v340_v3 }
 0x145   : > { %v345_v45 = vpop.xlane.xlu1 %344 }
 0x146   : > { %581 = vrcp.f32 %v345_v45 }
 0x147   : > { %v350_v46 = vpop.xlane.xlu0 %349 }
 0x148   : > { %583 = vrcp.f32 %v350_v46 }
 0x149   : > { %v446_v47 = vpop.permute.xlu1 %445 }
 0x14a   : > { %460 = vst [vmem:[%s685_s22 + $0x90] sm:$0xf] %v446_v47  ;;  %461 = vst [vmem:[%s685_s22 + $0x98] sm:$0xf] %v446_v47 }
 0x14c   : > { %v576_v5 = vpop.eup %575 }
 0x14d   : > { %v364_v48 = vmul.f32 %v576_v5, %v693_v54  ;;  %v365_v49 = vmul.f32 %v576_v5, %v697_v55 }
 0x14e   : > { %v578_v50 = vpop.eup %577 }
 0x14f   : > { %v362_v51 = vmul.f32 %v578_v50, %v701_v58  ;;  %v363_v52 = vmul.f32 %v578_v50, %v705_v61  ;;  %376 = vst [vmem:[%s685_s22 + $0x20] sm:$0xf] %v364_v48  ;;  %377 = vst [vmem:[%s685_s22 + $0x28] sm:$0xf] %v365_v49  ;;  %v442_v53 = vpop.permute.xlu0 %441 }
 0x150   : > { %458 = vst [vmem:[%s685_s22 + $0x70] sm:$0xf] %v442_v53  ;;  %459 = vst [vmem:[%s685_s22 + $0x78] sm:$0xf] %v442_v53 }
 0x151   : > { %v580_v56 = vpop.eup %579  ;;  %374 = vst [vmem:[%s685_s22] sm:$0xf] %v362_v51  ;;  %375 = vst [vmem:[%s685_s22 + $0x8] sm:$0xf] %v363_v52 }
 0x152   : > { %v366_v54 = vmul.f32 %v580_v56, %v713_v1  ;;  %v367_v55 = vmul.f32 %v580_v56, %v715_v7 }
 0x153   : > { %v582_v57 = vpop.eup %581 }
 0x154   : > { %v368_v58 = vmul.f32 %v582_v57, %v719_v10  ;;  %v369_v59 = vmul.f32 %v582_v57, %v723_v12  ;;  %378 = vst [vmem:[%s685_s22 + $0x40] sm:$0xf] %v366_v54  ;;  %379 = vst [vmem:[%s685_s22 + $0x48] sm:$0xf] %v367_v55 }
 0x155   : > { %v584_v60 = vpop.eup %583 }
 0x156   : > { %380 = vst [vmem:[%s685_s22 + $0x60] sm:$0xf] %v368_v58  ;;  %381 = vst [vmem:[%s685_s22 + $0x68] sm:$0xf] %v369_v59  ;;  %v370_v61 = vmul.f32 %v584_v60, %v729_v15  ;;  %v371_v62 = vmul.f32 %v584_v60, %v733_v19 }
 0x158   : > { %382 = vst [vmem:[%s685_s22 + $0x80] sm:$0xf] %v370_v61  ;;  %383 = vst [vmem:[%s685_s22 + $0x88] sm:$0xf] %v371_v62 }
 0x17a   : > { %v355_v63 = vpop.xlane.xlu1 %354 }
 0x17b   : > { %585 = vrcp.f32 %v355_v63 }
 0x17e   : > { %v450_v0 = vpop.permute.xlu1 %449 }
 0x17f   : > { %462 = vst [vmem:[%s685_s22 + $0xb0] sm:$0xf] %v450_v0  ;;  %463 = vst [vmem:[%s685_s22 + $0xb8] sm:$0xf] %v450_v0 }
 0x188   : > { %v586_v1 = vpop.eup %585 }
 0x189   : > { %v372_v2 = vmul.f32 %v586_v1, %v572_v17  ;;  %v373_v4 = vmul.f32 %v586_v1, %v574_v30 }
 0x18b   : > { %384 = vst [vmem:[%s685_s22 + $0xa0] sm:$0xf] %v372_v2  ;;  %385 = vst [vmem:[%s685_s22 + $0xa8] sm:$0xf] %v373_v4 }
 0x18c PF: > { %s12_s9 = sadd.s32 1, %s593_s9  }
 0x18d   : > { %p9_p4 = scmp.ge.s32.totalorder %s12_s9, 4  }
 0x18f   :  { %11 = sbr.rel (!%p9_p4) target bundleno = 1 (0x1), region = 59 }

</bundles_post_ra>
